<compile_context>
chip_gen: v7x
topology: tpu7x:2x2x1
jax: 0.10.0
libtpu: 0.0.40
codegen_flags: <defaults>
</compile_context>

<pallas_src>
import jax
import jax.numpy as jnp
from jax.experimental import pallas as pl
from jax.experimental.pallas import tpu as pltpu

LANE = 128           # lane width: pad hidden/out feature dims to this
SUBLANE_BF16 = 16    # bf16 sublane packing: batch tiles are multiples of 16
MAX_BATCH_TILE = 2048


def _round_up(x, m):
    return ((x + m - 1) // m) * m


# ---------------------------------------------------------------------------
# Kernel: fused 3-layer MLP on one batch tile. Weights/biases are resident
# (constant index_map) across the batch grid.
# ---------------------------------------------------------------------------
def _mlp_kernel(x_ref, w1_ref, b1_ref, w2_ref, b2_ref, w3_ref, b3_ref, o_ref):
    # Layer 1: x is (tb, in_dim) with in_dim possibly << 128; Mosaic pads the
    # small contraction dim internally. f32 MXU accumulate, f32 epilogue.
    h = jnp.dot(x_ref[...], w1_ref[...], preferred_element_type=jnp.float32)
    h = jnp.maximum(h + b1_ref[...], 0.0)
    # Layer 2.
    h = jnp.dot(h.astype(w2_ref.dtype), w2_ref[...],
                preferred_element_type=jnp.float32)
    h = jnp.maximum(h + b2_ref[...], 0.0)
    # Output layer (logits, no activation).
    out = jnp.dot(h.astype(w3_ref.dtype), w3_ref[...],
                  preferred_element_type=jnp.float32)
    out = out + b3_ref[...]
    # bf16 cast is the very last op (halves output HBM writeback).
    o_ref[...] = out.astype(o_ref.dtype)


# ---------------------------------------------------------------------------
# One-time parameter preparation: zero-pad hidden/out dims to lane-dense 128,
# biases as (1, fan_out) rows, weights cast to bf16 for the MXU, biases f32.
# w1 keeps its true (in_dim, hp) row count — x is not lane-padded.
# ---------------------------------------------------------------------------
def prepare_pi_params(params):
    w1, b1 = params["w1"], params["b1"]
    w2, b2 = params["w2"], params["b2"]
    w3, b3 = params["w3"], params["b3"]

    in_dim, hidden = w1.shape
    out_dim = w3.shape[1]
    hp = _round_up(hidden, LANE)
    op = _round_up(out_dim, LANE)

    def pad_w(w, r, c):
        return jnp.pad(w, ((0, r - w.shape[0]), (0, c - w.shape[1])))

    def pad_b(b, c):
        return jnp.pad(b.reshape(1, -1), ((0, 0), (0, c - b.shape[0])))

    return {
        "w1": pad_w(w1, in_dim, hp).astype(jnp.bfloat16),
        "b1": pad_b(b1, hp).astype(jnp.float32),
        "w2": pad_w(w2, hp, hp).astype(jnp.bfloat16),
        "b2": pad_b(b2, hp).astype(jnp.float32),
        "w3": pad_w(w3, hp, op).astype(jnp.bfloat16),
        "b3": pad_b(b3, op).astype(jnp.float32),
        "in_dim": in_dim,
        "out_dim": out_dim,
        "hp": hp,
        "op": op,
    }


# ---------------------------------------------------------------------------
# Forward pass: pad the batch only, run the tiled Pallas kernel, slice result.
# Returns bf16 logits of shape (B, out_dim).
# ---------------------------------------------------------------------------
def pi_forward(x, prep):
    hp, op = prep["hp"], prep["op"]
    in_dim, out_dim = prep["in_dim"], prep["out_dim"]

    B = x.shape[0]
    # Batch padding: multiple of 16 (bf16 sublane packing).
    b_min = _round_up(max(B, SUBLANE_BF16), SUBLANE_BF16)
    # Force >=2 grid steps when possible so v7x can shard over both TCs;
    # otherwise just cap the tile at MAX_BATCH_TILE.
    if b_min > SUBLANE_BF16:
        n_tiles = max((b_min + MAX_BATCH_TILE - 1) // MAX_BATCH_TILE, 2)
    else:
        n_tiles = 1
    tb = _round_up((b_min + n_tiles - 1) // n_tiles, SUBLANE_BF16)
    b_pad = tb * n_tiles

    # Batch-only padding; no lane padding of x in HBM (in_dim stays tiny).
    x_p = jnp.pad(x, ((0, b_pad - B), (0, 0))).astype(jnp.bfloat16)

    w1, b1 = prep["w1"], prep["b1"]
    w2, b2 = prep["w2"], prep["b2"]
    w3, b3 = prep["w3"], prep["b3"]

    resident = lambda a: pl.BlockSpec(a.shape, lambda i: (0, 0))

    flops = 2 * b_pad * (in_dim * hp + hp * hp + hp * op)
    bytes_accessed = (x_p.size * 2
                      + (w1.size + w2.size + w3.size) * 2
                      + (b1.size + b2.size + b3.size) * 4
                      + b_pad * op * 2)

    out_padded = pl.pallas_call(
        _mlp_kernel,
        out_shape=jax.ShapeDtypeStruct((b_pad, op), jnp.bfloat16),
        grid_spec=pltpu.PrefetchScalarGridSpec(
            num_scalar_prefetch=0,
            grid=(n_tiles,),
            in_specs=[
                pl.BlockSpec((tb, in_dim), lambda i: (i, 0)),  # x: batch tiled
                resident(w1), resident(b1),                    # weights resident
                resident(w2), resident(b2),
                resident(w3), resident(b3),
            ],
            out_specs=pl.BlockSpec((tb, op), lambda i: (i, 0)),
        ),
        compiler_params=pltpu.CompilerParams(
            dimension_semantics=("parallel",),   # v7x: shard batch over 2 TCs
        ),
        cost_estimate=pl.CostEstimate(
            flops=flops, transcendentals=0, bytes_accessed=bytes_accessed),
    )(x_p, w1, b1, w2, b2, w3, b3)

    return out_padded[:B, :out_dim]


# ---------------------------------------------------------------------------
# Deterministic PyTorch-Linear-like init (uniform, fan-in bound).
# ---------------------------------------------------------------------------
def init_pi_params(key, in_dim, out_dim, hidden_dim):
    ks = jax.random.split(key, 6)

    def lin(kw, kb, fan_in, fan_out):
        bound = 1.0 / jnp.sqrt(fan_in)
        w = jax.random.uniform(kw, (fan_in, fan_out), jnp.float32, -bound, bound)
        b = jax.random.uniform(kb, (fan_out,), jnp.float32, -bound, bound)
        return w, b

    w1, b1 = lin(ks[0], ks[1], in_dim, hidden_dim)
    w2, b2 = lin(ks[2], ks[3], hidden_dim, hidden_dim)
    w3, b3 = lin(ks[4], ks[5], hidden_dim, out_dim)
    return {"w1": w1, "b1": b1, "w2": w2, "b2": b2, "w3": w3, "b3": b3}


if __name__ == "__main__":
    # Small shapes consistent with a CartPole-style REINFORCE policy.
    B, in_dim, hidden_dim, out_dim = 2, 4, 32, 2

    key = jax.random.PRNGKey(0)
    k_params, k_x, k_x2 = jax.random.split(key, 3)
    params = init_pi_params(k_params, in_dim, out_dim, hidden_dim)
    prep = prepare_pi_params(params)

    # Jit the whole wrapper: the B~2 act() path is launch-latency-bound, so
    # one fused XLA program per step matters more than tiling.
    fwd = jax.jit(lambda xx: pi_forward(xx, prep))

    x = jax.random.normal(k_x, (B, in_dim), jnp.float32)
    logits = fwd(x)
    jax.block_until_ready(logits)

    # Reference with matching numerics (bf16 matmul inputs, f32 accumulate).
    def ref_bf16(x, p):
        bf = jnp.bfloat16
        h = jnp.dot(x.astype(bf), p["w1"].astype(bf),
                    preferred_element_type=jnp.float32) + p["b1"]
        h = jnp.maximum(h, 0.0)
        h = jnp.dot(h.astype(bf), p["w2"].astype(bf),
                    preferred_element_type=jnp.float32) + p["b2"]
        h = jnp.maximum(h, 0.0)
        return jnp.dot(h.astype(bf), p["w3"].astype(bf),
                       preferred_element_type=jnp.float32) + p["b3"]

    got = logits.astype(jnp.float32)
    expected = ref_bf16(x, params)
    assert logits.shape == (B, out_dim)
    assert logits.dtype == jnp.bfloat16
    assert jnp.allclose(got, expected, atol=2e-2, rtol=2e-2), (
        jnp.max(jnp.abs(got - expected)))

    # Full-f32 sanity check (loose tolerance for bf16 matmul/store rounding).
    def ref_f32(x, p):
        h = jnp.maximum(x @ p["w1"] + p["b1"], 0.0)
        h = jnp.maximum(h @ p["w2"] + p["b2"], 0.0)
        return h @ p["w3"] + p["b3"]

    assert jnp.allclose(got, ref_f32(x, params), atol=6e-2, rtol=6e-2)

    # Batched-rollout path: exercises the multi-step batch grid (n_tiles >= 2).
    B2 = 300
    x2 = jax.random.normal(k_x2, (B2, in_dim), jnp.float32)
    logits2 = fwd(x2)
    jax.block_until_ready(logits2)
    assert logits2.shape == (B2, out_dim)
    assert jnp.allclose(logits2.astype(jnp.float32), ref_bf16(x2, params),
                        atol=2e-2, rtol=2e-2)

    print("KERNEL_OK")
</pallas_src>

<mosaic_0001>
module attributes {stable_mosaic.version = 11 : i64} {
  func.func @_mlp_kernel(%arg0: i32, %arg1: memref<16x4xbf16, #tpu.memory_space<vmem>>, %arg2: memref<4x128xbf16, #tpu.memory_space<vmem>>, %arg3: memref<1x128xf32, #tpu.memory_space<vmem>>, %arg4: memref<128x128xbf16, #tpu.memory_space<vmem>>, %arg5: memref<1x128xf32, #tpu.memory_space<vmem>>, %arg6: memref<128x128xbf16, #tpu.memory_space<vmem>>, %arg7: memref<1x128xf32, #tpu.memory_space<vmem>>, %arg8: memref<16x128xbf16, #tpu.memory_space<vmem>>) attributes {dimension_semantics = [#tpu.dimension_semantics<parallel>], iteration_bounds = array<i64: 1>, scalar_prefetch = 0 : i64, scratch_operands = 0 : i64, tpu.core_type = #tpu.core_type<tc>, window_params = [{transform_indices = @transform_0, window_bounds = array<i64: 16, 4>}, {pipeline_mode = #tpu.pipeline_mode<synchronous>, transform_indices = @transform_1, window_bounds = array<i64: 4, 128>}, {pipeline_mode = #tpu.pipeline_mode<synchronous>, transform_indices = @transform_2, window_bounds = array<i64: 1, 128>}, {pipeline_mode = #tpu.pipeline_mode<synchronous>, transform_indices = @transform_3, window_bounds = array<i64: 128, 128>}, {pipeline_mode = #tpu.pipeline_mode<synchronous>, transform_indices = @transform_4, window_bounds = array<i64: 1, 128>}, {pipeline_mode = #tpu.pipeline_mode<synchronous>, transform_indices = @transform_5, window_bounds = array<i64: 128, 128>}, {pipeline_mode = #tpu.pipeline_mode<synchronous>, transform_indices = @transform_6, window_bounds = array<i64: 1, 128>}, {transform_indices = @transform_7, window_bounds = array<i64: 16, 128>}]} {
    %c0 = arith.constant 0 : index
    %c0_0 = arith.constant 0 : index
    %0 = vector.load %arg1[%c0, %c0_0] : memref<16x4xbf16, #tpu.memory_space<vmem>>, vector<16x4xbf16>
    %c0_1 = arith.constant 0 : index
    %c0_2 = arith.constant 0 : index
    %1 = vector.load %arg2[%c0_1, %c0_2] : memref<4x128xbf16, #tpu.memory_space<vmem>>, vector<4x128xbf16>
    %cst = arith.constant dense<0.000000e+00> : vector<16x128xf32>
    %2 = tpu.matmul %0, %1, %cst {dimension_numbers = #tpu.dot_dimension_numbers<[1], [0], [0], [1], [0, 0, 1, 1], [], []>} : vector<16x4xbf16>, vector<4x128xbf16>, vector<16x128xf32> -> vector<16x128xf32>
    %c0_3 = arith.constant 0 : index
    %c0_4 = arith.constant 0 : index
    %3 = vector.load %arg3[%c0_3, %c0_4] : memref<1x128xf32, #tpu.memory_space<vmem>>, vector<1x128xf32>
    %4 = vector.broadcast %3 : vector<1x128xf32> to vector<16x128xf32>
    %5 = arith.addf %2, %4 : vector<16x128xf32>
    %cst_5 = arith.constant 0.000000e+00 : f32
    %6 = vector.broadcast %cst_5 : f32 to vector<16x128xf32>
    %7 = arith.maximumf %5, %6 : vector<16x128xf32>
    %8 = arith.truncf %7 : vector<16x128xf32> to vector<16x128xbf16>
    %c0_6 = arith.constant 0 : index
    %c0_7 = arith.constant 0 : index
    %9 = vector.load %arg4[%c0_6, %c0_7] : memref<128x128xbf16, #tpu.memory_space<vmem>>, vector<128x128xbf16>
    %cst_8 = arith.constant dense<0.000000e+00> : vector<16x128xf32>
    %10 = tpu.matmul %8, %9, %cst_8 {dimension_numbers = #tpu.dot_dimension_numbers<[1], [0], [0], [1], [0, 0, 1, 1], [], []>} : vector<16x128xbf16>, vector<128x128xbf16>, vector<16x128xf32> -> vector<16x128xf32>
    %c0_9 = arith.constant 0 : index
    %c0_10 = arith.constant 0 : index
    %11 = vector.load %arg5[%c0_9, %c0_10] : memref<1x128xf32, #tpu.memory_space<vmem>>, vector<1x128xf32>
    %12 = vector.broadcast %11 : vector<1x128xf32> to vector<16x128xf32>
    %13 = arith.addf %10, %12 : vector<16x128xf32>
    %cst_11 = arith.constant 0.000000e+00 : f32
    %14 = vector.broadcast %cst_11 : f32 to vector<16x128xf32>
    %15 = arith.maximumf %13, %14 : vector<16x128xf32>
    %16 = arith.truncf %15 : vector<16x128xf32> to vector<16x128xbf16>
    %c0_12 = arith.constant 0 : index
    %c0_13 = arith.constant 0 : index
    %17 = vector.load %arg6[%c0_12, %c0_13] : memref<128x128xbf16, #tpu.memory_space<vmem>>, vector<128x128xbf16>
    %cst_14 = arith.constant dense<0.000000e+00> : vector<16x128xf32>
    %18 = tpu.matmul %16, %17, %cst_14 {dimension_numbers = #tpu.dot_dimension_numbers<[1], [0], [0], [1], [0, 0, 1, 1], [], []>} : vector<16x128xbf16>, vector<128x128xbf16>, vector<16x128xf32> -> vector<16x128xf32>
    %c0_15 = arith.constant 0 : index
    %c0_16 = arith.constant 0 : index
    %19 = vector.load %arg7[%c0_15, %c0_16] : memref<1x128xf32, #tpu.memory_space<vmem>>, vector<1x128xf32>
    %20 = vector.broadcast %19 : vector<1x128xf32> to vector<16x128xf32>
    %21 = arith.addf %18, %20 : vector<16x128xf32>
    %22 = arith.truncf %21 : vector<16x128xf32> to vector<16x128xbf16>
    %c0_17 = arith.constant 0 : index
    %c0_18 = arith.constant 0 : index
    %23 = vector.load %arg8[%c0_17, %c0_18] : memref<16x128xbf16, #tpu.memory_space<vmem>>, vector<16x128xbf16>
    tpu.vector_store %arg8[%c0_17, %c0_18], %22 {strides = array<i32>} : memref<16x128xbf16, #tpu.memory_space<vmem>>, vector<16x128xbf16>,
    return
  }
  func.func @transform_0(%arg0: i32) -> (i32, i32) {
    %c0_i32 = arith.constant 0 : i32
    %c0_i32_0 = arith.constant 0 : i32
    return %arg0, %c0_i32 : i32, i32
  }
  func.func @transform_1(%arg0: i32) -> (i32, i32) {
    %c0_i32 = arith.constant 0 : i32
    %c0_i32_0 = arith.constant 0 : i32
    %c0_i32_1 = arith.constant 0 : i32
    return %c0_i32, %c0_i32_0 : i32, i32
  }
  func.func @transform_2(%arg0: i32) -> (i32, i32) {
    %c0_i32 = arith.constant 0 : i32
    %c0_i32_0 = arith.constant 0 : i32
    %c0_i32_1 = arith.constant 0 : i32
    return %c0_i32, %c0_i32_0 : i32, i32
  }
  func.func @transform_3(%arg0: i32) -> (i32, i32) {
    %c0_i32 = arith.constant 0 : i32
    %c0_i32_0 = arith.constant 0 : i32
    %c0_i32_1 = arith.constant 0 : i32
    return %c0_i32, %c0_i32_0 : i32, i32
  }
  func.func @transform_4(%arg0: i32) -> (i32, i32) {
    %c0_i32 = arith.constant 0 : i32
    %c0_i32_0 = arith.constant 0 : i32
    %c0_i32_1 = arith.constant 0 : i32
    return %c0_i32, %c0_i32_0 : i32, i32
  }
  func.func @transform_5(%arg0: i32) -> (i32, i32) {
    %c0_i32 = arith.constant 0 : i32
    %c0_i32_0 = arith.constant 0 : i32
    %c0_i32_1 = arith.constant 0 : i32
    return %c0_i32, %c0_i32_0 : i32, i32
  }
  func.func @transform_6(%arg0: i32) -> (i32, i32) {
    %c0_i32 = arith.constant 0 : i32
    %c0_i32_0 = arith.constant 0 : i32
    %c0_i32_1 = arith.constant 0 : i32
    return %c0_i32, %c0_i32_0 : i32, i32
  }
  func.func @transform_7(%arg0: i32) -> (i32, i32) {
    %c0_i32 = arith.constant 0 : i32
    %c0_i32_0 = arith.constant 0 : i32
    return %arg0, %c0_i32 : i32, i32
  }
}

</mosaic_0001>

<bundles_post_ra>
// kernel: _lambda_.1
= control target key start
LH: loop header
LB: loop body
LE: loop exit
PB: predicated region body
PF: predicated region fallthrough
CT: control target
= control target key end

     0   :  { %12 = vsyncpa [#allocation3], 0  ;;  %s643_s0 = inlined_call_operand.vmem [shape: bf16[16,4], index: 0, kind: input, shape index: {}]   ;;  %s644_s1 = inlined_call_operand.vmem [shape: bf16[4,128], index: 1, kind: input, shape index: {}]   ;;  %s645_s2 = inlined_call_operand.vmem [shape: f32[1,128], index: 2, kind: input, shape index: {}]   ;;  %s646_s3 = inlined_call_operand.hbm [shape: bf16[128,128], index: 3, kind: input, shape index: {}]   ;;  %s647_s4 = inlined_call_operand.vmem [shape: f32[1,128], index: 4, kind: input, shape index: {}]   ;;  %s648_s5 = inlined_call_operand.hbm [shape: bf16[128,128], index: 5, kind: input, shape index: {}]   ;;  %s649_s6 = inlined_call_operand.vmem [shape: f32[1,128], index: 6, kind: input, shape index: {}]   ;;  %s650_s7 = inlined_call_operand.vmem [shape: bf16[16,128], index: 7, kind: output, shape index: {}]  }
   0x1   :  { %13 = vsyncpa [#allocation5], 0  ;;  %s532_s24 = smov [#allocation2]   ;;  %s484_s28 = scalar_lea.hbm %s646_s3, 1024 }
   0x2   :  { %s25_s25 = sshll.u32 %s532_s24, 4  ;;  %p485_p0 = scmp.ne.s32.totalorder %s646_s3, %s484_s28  ;;  %s26_s25 = int_to_ptr.vmem [resolvable:$true] %s25_s25 }
   0x3   :  { %p488_p1 = scmp.lt.u32.totalorder %s484_s28, %s646_s3 }
   0x5   :  { %p490_p2 = pnand %p488_p1, %p485_p0 }
   0x7   :  { %493 = shalt.err (!%p490_p2)
}
   0x8   :  { %s494_s10 = scalar_lea.vmem %s26_s25, 1024  ;;  %p499_p4 = scmp.lt.s32.totalorder %s26_s25, %s26_s25 }
   0x9   :  { %p495_p3 = scmp.ne.s32.totalorder %s26_s25, %s494_s10  ;;  %p500_p5 = scmp.lt.s32.totalorder %s494_s10, %s494_s10 }
   0xb   :  { %p501_p6 = por %p500_p5, %p499_p4 }
   0xd   :  { %p502_p7 = pnand %p501_p6, %p495_p3 }
   0xf   :  { %505 = shalt.err (!%p502_p7)
}
  0x10   :  { %s533_s11 = smov 64   ;;  %s534_s12 = smov 4  }
  0x11   :  { %31 = dma.hbm_to_vmem [thread:$0]  %s646_s3, 1024, %s26_s25, [#allocation3], %s533_s11, %s533_s11, %s534_s12  }
  0x12   :  { %s535_s15 = smov [#allocation4]   ;;  %s506_s19 = scalar_lea.hbm %s648_s5, 1024 }
  0x13   :  { %s39_s16 = sshll.u32 %s535_s15, 4  ;;  %p507_p8 = scmp.ne.s32.totalorder %s648_s5, %s506_s19  ;;  %s40_s16 = int_to_ptr.vmem [resolvable:$true] %s39_s16 }
  0x14   :  { %p510_p9 = scmp.lt.u32.totalorder %s506_s19, %s648_s5 }
  0x16   :  { %p512_p10 = pnand %p510_p9, %p507_p8 }
  0x18   :  { %515 = shalt.err (!%p512_p10)
}
  0x19   :  { %s516_s24 = scalar_lea.vmem %s40_s16, 1024  ;;  %p521_p12 = scmp.lt.s32.totalorder %s40_s16, %s40_s16 }
  0x1a   :  { %p517_p11 = scmp.ne.s32.totalorder %s40_s16, %s516_s24  ;;  %p522_p13 = scmp.lt.s32.totalorder %s516_s24, %s516_s24 }
  0x1c   :  { %p523_p0 = por %p522_p13, %p521_p12 }
  0x1e   :  { %p524_p1 = pnand %p523_p0, %p517_p11 }
  0x20   :  { %527 = shalt.err (!%p524_p1)
}
  0x21   :  { %45 = dma.hbm_to_vmem [thread:$0]  %s648_s5, 1024, %s40_s16, [#allocation5], %s533_s11, %s533_s11, %s534_s12  }
  0x22   :  { %528 = dma.done.wait [#allocation3], 1024  }
  0x23   :  { %529 = vsyncadd [#allocation3], 4294966272 }
  0x24   :  { %530 = dma.done.wait [#allocation5], 1024  }
  0x25   :  { %531 = vsyncadd [#allocation5], 4294966272  ;;  %v536_v0 = vmov 0.0   ;;  %vm537_vm0 = vmmov 0   ;;  %vm74_vm1 = vcmask 1041408   ;;  %v467_v3 = vld [vmem:[%s643_s0] sm:$0xff]  }
  0x26   :  { %415 = vmatprep.subr.bf16.mxu0 %v536_v0  ;;  %417 = vmatprep.mubr.msk.bf16.mxu0 %vm537_vm0, %v536_v0  ;;  %v57_v1 = vld [vmem:[%s644_s1] sm:$0x3]  ;;  %vm70_vm2 = vcmask 31744   ;;  %v469_v5 = vld [vmem:[#allocation2 + $0x8] sm:$0xff]   ;;  %v470_v6 = vld [vmem:[#allocation2 + $0x10] sm:$0xff]  }
  0x27   :  { %421 = vmatprep.subr.bf16.mxu1 %v536_v0  ;;  %437 = vmatprep.mubr.msk.bf16.mxu1 %vm537_vm0, %v536_v0  ;;  %v76_v2 = vsel %vm74_vm1, %v57_v1, 0  ;;  %v468_v4 = vld [vmem:[#allocation2] sm:$0xff]   ;;  %v471_v7 = vld [vmem:[#allocation2 + $0x18] sm:$0xff]   ;;  %v473_v9 = vld [vmem:[#allocation2 + $0x28] sm:$0xff]  }
  0x28   :  { %416 = vmatpush3.bf16.msra.mxu0 %v76_v2  ;;  %422 = vmatpush3.bf16.msra.mxu1 %v468_v4  ;;  %v472_v8 = vld [vmem:[#allocation2 + $0x20] sm:$0xff]   ;;  %v474_v10 = vld [vmem:[#allocation2 + $0x30] sm:$0xff]   ;;  %v475_v11 = vld [vmem:[#allocation2 + $0x38] sm:$0xff]  }
  0x29   :  { %441 = vmatprep.subr.bf16.mxu0 %v536_v0  ;;  %423 = vmatprep.subr.bf16.mxu1 %v536_v0  ;;  %v476_v12 = vld [vmem:[#allocation4] sm:$0xff]   ;;  %v477_v13 = vld [vmem:[#allocation4 + $0x8] sm:$0xff]   ;;  %v478_v14 = vld [vmem:[#allocation4 + $0x10] sm:$0xff]  }
  0x2a   :  { %v479_v15 = vld [vmem:[#allocation4 + $0x18] sm:$0xff]   ;;  %v480_v16 = vld [vmem:[#allocation4 + $0x20] sm:$0xff]   ;;  %v481_v17 = vld [vmem:[#allocation4 + $0x28] sm:$0xff]  }
  0x2b   :  { %418 = vmatmul.mubr.msk.bf16.vlgmr.msra.gmra.mrb[0].mxu0 %vm70_vm2, %v467_v3  ;;  %v365_v18 = vld [vmem:[%s645_s2] ss:$0 sm:$0xff]  ;;  %v482_v28 = vld [vmem:[#allocation4 + $0x30] sm:$0xff]   ;;  %v483_v29 = vld [vmem:[#allocation4 + $0x38] sm:$0xff]  }
  0x2c   :  { %457 = vmatprep.mubr.msk.bf16.mxu0 %vm537_vm0, %v536_v0  ;;  %424 = vmatpush3.bf16.msra.mxu1 %v469_v5  ;;  %v368_v30 = vld [vmem:[%s647_s4] ss:$0 sm:$0xff] }
  0x2d   :  { %425 = vmatprep.subr.bf16.mxu1 %v536_v0  ;;  %442 = vmatpush3.bf16.msra.mxu0 %v476_v12  ;;  %v377_v40 = vld [vmem:[%s649_s6] ss:$0 sm:$0xff] }
  0x2e   :  { %443 = vmatprep.subr.bf16.mxu0 %v536_v0 }
  0x30   :  { %426 = vmatpush3.bf16.msra.mxu1 %v470_v6 }
  0x31   :  { %427 = vmatprep.subr.bf16.mxu1 %v536_v0  ;;  %444 = vmatpush3.bf16.msra.mxu0 %v477_v13 }
  0x32   :  { %445 = vmatprep.subr.bf16.mxu0 %v536_v0 }
  0x34   :  { %428 = vmatpush3.bf16.msra.mxu1 %v471_v7 }
  0x35   :  { %429 = vmatprep.subr.bf16.mxu1 %v536_v0  ;;  %446 = vmatpush3.bf16.msra.mxu0 %v478_v14 }
  0x36   :  { %447 = vmatprep.subr.bf16.mxu0 %v536_v0 }
  0x38   :  { %430 = vmatpush3.bf16.msra.mxu1 %v472_v8 }
  0x39   :  { %431 = vmatprep.subr.bf16.mxu1 %v536_v0  ;;  %448 = vmatpush3.bf16.msra.mxu0 %v479_v15 }
  0x3a   :  { %449 = vmatprep.subr.bf16.mxu0 %v536_v0 }
  0x3c   :  { %432 = vmatpush3.bf16.msra.mxu1 %v473_v9 }
  0x3d   :  { %433 = vmatprep.subr.bf16.mxu1 %v536_v0  ;;  %450 = vmatpush3.bf16.msra.mxu0 %v480_v16 }
  0x3e   :  { %451 = vmatprep.subr.bf16.mxu0 %v536_v0 }
  0x40   :  { %434 = vmatpush3.bf16.msra.mxu1 %v474_v10 }
  0x41   :  { %435 = vmatprep.subr.bf16.mxu1 %v536_v0  ;;  %452 = vmatpush3.bf16.msra.mxu0 %v481_v17 }
  0x42   :  { %453 = vmatprep.subr.bf16.mxu0 %v536_v0 }
  0x44   :  { %436 = vmatpush3.bf16.msra.mxu1 %v475_v11 }
  0x45   :  { %454 = vmatpush3.bf16.msra.mxu0 %v482_v28 }
  0x46   :  { %455 = vmatprep.subr.bf16.mxu0 %v536_v0 }
  0x49   :  { %456 = vmatpush3.bf16.msra.mxu0 %v483_v29 }
  0xfe   :  { %v112_v19 = vpop.f32.mrb[0].mxu0 }
  0xff   :  { %v113_v20 = vadd.f32 %v365_v18, %v112_v19  ;;  %v419_v21 = vpop.f32.mrb[1].mxu0 }
 0x100   :  { %v115_v22 = vpop.f32.mrb[2].mxu0 }
 0x101   :  { %v116_v23 = vadd.f32 %v365_v18, %v115_v22  ;;  %v420_v24 = vpop.f32.mrb[3].mxu0  ;;  %v119_v25 = vmax.f32 %v113_v20, 0.0 }
 0x103   :  { %v120_v26 = vmax.f32 %v116_v23, 0.0 }
 0x105   :  { %v121_v27 = vpack.c.bf16 %v120_v26, %v119_v25 }
 0x107   :  { %438 = vmatmul.mubr.bf16.vlgmr.msra.gmra.mrb[0].mxu1 %v121_v27 }
 0x1da   :  { %v227_v31 = vpop.f32.mrb[0].mxu1 }
 0x1db   :  { %v228_v32 = vadd.f32 %v368_v30, %v227_v31  ;;  %v439_v33 = vpop.f32.mrb[1].mxu1 }
 0x1dc   :  { %v230_v34 = vpop.f32.mrb[2].mxu1 }
 0x1dd   :  { %v231_v35 = vadd.f32 %v368_v30, %v230_v34  ;;  %v440_v36 = vpop.f32.mrb[3].mxu1  ;;  %v234_v37 = vmax.f32 %v228_v32, 0.0 }
 0x1df   :  { %v235_v38 = vmax.f32 %v231_v35, 0.0 }
 0x1e1   :  { %v236_v39 = vpack.c.bf16 %v235_v38, %v234_v37 }
 0x1e3   :  { %458 = vmatmul.mubr.bf16.vlgmr.msra.gmra.mrb[4].mxu0 %v236_v39 }
 0x2b6   :  { %v342_v41 = vpop.f32.mrb[4].mxu0 }
 0x2b7   :  { %v459_v42 = vpop.f32.mrb[5].mxu0  ;;  %v343_v44 = vadd.f32 %v377_v40, %v342_v41 }
 0x2b8   :  { %v345_v43 = vpop.f32.mrb[6].mxu0 }
 0x2b9   :  { %v346_v45 = vadd.f32 %v377_v40, %v345_v43  ;;  %v460_v46 = vpop.f32.mrb[7].mxu0 }
 0x2bb   :  { %v393_v47 = vpack.c.bf16 %v346_v45, %v343_v44 }
 0x2bd   :  { %394 = vst [vmem:[%s650_s7] sm:$0xff] %v393_v47  }
 0x2be   :  { %363 = vsyncpa [#allocation3], 1 }
 0x2bf   :  { %364 = vsyncpa [#allocation5], 1 }

</bundles_post_ra>
